<compile_context>
chip_gen: v7x
topology: tpu7x:2x2x1
jax: 0.10.0
libtpu: 0.0.40
codegen_flags: <defaults>
</compile_context>

<pallas_src>
import functools

import jax
import jax.numpy as jnp
from jax import lax
from jax.experimental import pallas as pl
from jax.experimental.pallas import tpu as pltpu


# ----------------------------------------------------------------------------
# Deterministic parameter init: re-implementation of micrograd's RNG(42)
# ----------------------------------------------------------------------------
class RNG:
    """xorshift* RNG used by micrograd (same numbers as the PyTorch script)."""

    def __init__(self, seed):
        self.state = seed

    def random_u32(self):
        self.state ^= (self.state >> 12) & 0xFFFFFFFFFFFFFFFF
        self.state ^= (self.state << 25) & 0xFFFFFFFFFFFFFFFF
        self.state ^= (self.state >> 27) & 0xFFFFFFFFFFFFFFFF
        return ((self.state * 0x2545F4914F6CDD1D) >> 32) & 0xFFFFFFFF

    def random(self):
        return (self.random_u32() >> 8) / 16777216.0

    def uniform(self, a=-1.0, b=1.0):
        return a + (b - a) * self.random()


def _round_up(x, m):
    return ((x + m - 1) // m) * m


# ----------------------------------------------------------------------------
# Kernel 1: faithful single-sample Neuron.forward (gridless, SMEM bias)
# ----------------------------------------------------------------------------
def neuron_kernel(w_ref, x_ref, b_ref, o_ref, *, nonlin: bool):
    # w_ref, x_ref: (1, nin) VMEM; b_ref: (1, 1) SMEM scalar; o_ref: (1, 1) VMEM.
    act = jnp.sum(w_ref[...] * x_ref[...], keepdims=True) + b_ref[0, 0]
    if nonlin:
        act = jnp.tanh(act)
    o_ref[...] = act.astype(o_ref.dtype)


def neuron_forward(w, x, b, *, nonlin: bool = True):
    """Pallas equivalent of Neuron.forward for one input x of shape (nin,).

    Returns a shape-(1,) float32 array (matches the PyTorch `act` shape).
    For nin=32 this path is launch/DMA-latency bound; a dense (rows, 128)
    repack only matters for much larger nin.
    """
    nin = w.shape[0]
    w2 = w.reshape(1, nin).astype(jnp.float32)
    x2 = x.reshape(1, nin).astype(jnp.float32)
    b2 = b.reshape(1, 1).astype(jnp.float32)

    out = pl.pallas_call(
        functools.partial(neuron_kernel, nonlin=nonlin),
        out_shape=jax.ShapeDtypeStruct((1, 1), jnp.float32),
        in_specs=[
            pl.BlockSpec(memory_space=pltpu.MemorySpace.VMEM),  # w (whole array)
            pl.BlockSpec(memory_space=pltpu.MemorySpace.VMEM),  # x (whole array)
            pl.BlockSpec(memory_space=pltpu.MemorySpace.SMEM),  # b (scalar)
        ],
        out_specs=pl.BlockSpec(memory_space=pltpu.MemorySpace.VMEM),
    )(w2, x2, b2)
    return out.reshape(1)


# ----------------------------------------------------------------------------
# Kernel 2: batched Neuron.forward — same neuron applied to B inputs at once.
#           X stays in its natural (B, nin) layout; the nin axis is contracted
#           on the MXU; the (1, tb) output tile is lane-dense.
# ----------------------------------------------------------------------------
def neuron_batched_kernel(w_ref, x_ref, b_ref, o_ref, *, nonlin: bool):
    # w_ref: (1, nin) VMEM (resident); x_ref: (tb, nin) VMEM; b_ref: (1, 1) SMEM;
    # o_ref: (1, tb) VMEM.
    act = lax.dot_general(
        w_ref[...], x_ref[...],
        dimension_numbers=(((1,), (1,)), ((), ())),   # contract nin with nin
        preferred_element_type=jnp.float32,           # f32 MXU accumulate
    ) + b_ref[0, 0]
    if nonlin:
        act = jnp.tanh(act)                           # f32 epilogue (v5e-safe)
    o_ref[...] = act.astype(o_ref.dtype)


def _choose_batch_tile(B, nin, itemsize, target_tile_bytes, max_tb):
    """Pick a lane-dense batch tile that amortizes per-step pipeline overhead."""
    b128 = _round_up(B, 128)
    # Size the (tb, nin) X tile to ~target_tile_bytes (>= 512 KiB recommended).
    tb = _round_up(max(1, target_tile_bytes // max(1, nin * itemsize)), 128)
    tb = min(tb, max_tb, b128)
    # Keep >= 2 grid tiles when the batch allows it, so the "parallel" axis can
    # shard across v7x's two TensorCores (no-op on single-TC v5e/v6e).
    if b128 >= 256 and b128 // tb < 2:
        tb = min(tb, _round_up(b128 // 2, 128))
    return tb


def neuron_forward_batched(w, x_batch, b, *, nonlin: bool = True,
                           in_dtype=jnp.float32,
                           target_tile_bytes: int = 1 << 20,
                           max_tb: int = 8192):
    """Apply the neuron to a batch of inputs x_batch: (B, nin) -> (B,).

    `in_dtype=jnp.bfloat16` halves HBM traffic for the dominant X stream while
    keeping float32 MXU accumulation and a float32 tanh/bias epilogue.
    """
    B, nin = x_batch.shape
    in_dtype = jnp.dtype(in_dtype)
    itemsize = in_dtype.itemsize

    tb = _choose_batch_tile(B, nin, itemsize, target_tile_bytes, max_tb)
    num_tiles = pl.cdiv(B, tb)
    b_pad = num_tiles * tb

    w2 = w.reshape(1, nin).astype(in_dtype)
    xb = x_batch.astype(in_dtype)               # natural layout; no pad/transpose pass
    b2 = b.reshape(1, 1).astype(jnp.float32)

    cost = pl.CostEstimate(
        flops=2 * nin * b_pad,
        transcendentals=b_pad if nonlin else 0,
        bytes_accessed=itemsize * (B * nin + nin) + 4 * (b_pad + 1),
    )

    out = pl.pallas_call(
        functools.partial(neuron_batched_kernel, nonlin=nonlin),
        out_shape=jax.ShapeDtypeStruct((1, b_pad), jnp.float32),
        grid=(num_tiles,),
        in_specs=[
            pl.BlockSpec((1, nin), lambda i: (0, 0)),            # w (resident)
            pl.BlockSpec((tb, nin), lambda i: (i, 0)),           # X tile (natural layout)
            pl.BlockSpec(memory_space=pltpu.MemorySpace.SMEM),   # b (scalar)
        ],
        out_specs=pl.BlockSpec((1, tb), lambda i: (0, i)),
        compiler_params=pltpu.CompilerParams(
            dimension_semantics=("parallel",)),                  # batch tiles independent
        cost_estimate=cost,
    )(w2, xb, b2)
    # Padded / out-of-bounds columns hold garbage; discard them here. Never
    # reduce over the raw (1, b_pad) output before this slice.
    return out[0, :B]


if __name__ == "__main__":
    nin = 32  # hidden size consistent with Neuron(nin)

    # Parameters, initialized exactly like the PyTorch module (RNG(42)).
    rng = RNG(42)
    w_host = [rng.uniform(-1, 1) * nin ** (-0.5) for _ in range(nin)]
    w = jnp.asarray(w_host, dtype=jnp.float32)   # shape (nin,)
    b = jnp.zeros((1,), dtype=jnp.float32)       # shape (1,)

    key = jax.random.PRNGKey(0)
    kx, kb, kb2 = jax.random.split(key, 3)

    # --- single-sample forward (faithful to the module) ---
    x = jax.random.normal(kx, (nin,), dtype=jnp.float32)
    out = jax.block_until_ready(neuron_forward(w, x, b, nonlin=True))
    ref = jnp.tanh(jnp.sum(w * x) + b)
    assert out.shape == (1,)
    assert jnp.allclose(out, ref, atol=1e-5, rtol=1e-5), (out, ref)

    out_lin = jax.block_until_ready(neuron_forward(w, x, b, nonlin=False))
    ref_lin = jnp.sum(w * x) + b
    assert jnp.allclose(out_lin, ref_lin, atol=1e-5, rtol=1e-5), (out_lin, ref_lin)

    # --- batched forward, small batch (single ragged tile) ---
    B = 8
    xb = jax.random.normal(kb, (B, nin), dtype=jnp.float32)
    out_b = jax.block_until_ready(neuron_forward_batched(w, xb, b, nonlin=True))
    ref_b = jnp.tanh(xb @ w + b[0])
    assert out_b.shape == (B,)
    assert jnp.allclose(out_b, ref_b, atol=1e-5, rtol=1e-5), (out_b, ref_b)

    # --- batched forward, multi-tile grid with a ragged final block ---
    B2 = 300
    xb2 = jax.random.normal(kb2, (B2, nin), dtype=jnp.float32)
    out_b2 = jax.block_until_ready(neuron_forward_batched(w, xb2, b, nonlin=True))
    ref_b2 = jnp.tanh(xb2 @ w + b[0])
    assert out_b2.shape == (B2,)
    assert jnp.allclose(out_b2, ref_b2, atol=1e-5, rtol=1e-5)

    # --- batched forward with bf16 input stream (f32 accumulate/epilogue) ---
    out_bf = jax.block_until_ready(
        neuron_forward_batched(w, xb2, b, nonlin=True, in_dtype=jnp.bfloat16))
    assert jnp.allclose(out_bf, ref_b2, atol=3e-2, rtol=3e-2)

    print("KERNEL_OK")
</pallas_src>

<mosaic_0001>
module attributes {stable_mosaic.version = 11 : i64} {
  func.func @neuron_kernel(%arg0: memref<1x32xf32, #tpu.memory_space<vmem>>, %arg1: memref<1x32xf32, #tpu.memory_space<vmem>>, %arg2: memref<1x1xf32, #tpu.memory_space<smem>>, %arg3: memref<1x1xf32, #tpu.memory_space<vmem>>) attributes {dimension_semantics = [], scalar_prefetch = 0 : i64, scratch_operands = 0 : i64, tpu.core_type = #tpu.core_type<tc>} {
    %c0 = arith.constant 0 : index
    %c0_0 = arith.constant 0 : index
    %0 = vector.load %arg0[%c0, %c0_0] : memref<1x32xf32, #tpu.memory_space<vmem>>, vector<1x32xf32>
    %c0_1 = arith.constant 0 : index
    %c0_2 = arith.constant 0 : index
    %1 = vector.load %arg1[%c0_1, %c0_2] : memref<1x32xf32, #tpu.memory_space<vmem>>, vector<1x32xf32>
    %2 = arith.mulf %0, %1 : vector<1x32xf32>
    %3 = vector.shape_cast %2 : vector<1x32xf32> to vector<1x1x32xf32>
    %cst = arith.constant dense<0.000000e+00> : vector<1xf32>
    %4 = vector.multi_reduction <add>, %3, %cst [1, 2] : vector<1x1x32xf32> to vector<1xf32>
    %5 = vector.shape_cast %4 : vector<1xf32> to vector<1x1x1xf32>
    %6 = vector.extract %5[0, 0, 0] : f32 from vector<1x1x1xf32>
    %7 = vector.broadcast %6 : f32 to vector<1x1xf32>
    %c0_3 = arith.constant 0 : index
    %c0_4 = arith.constant 0 : index
    %8 = memref.load %arg2[%c0_3, %c0_4] : memref<1x1xf32, #tpu.memory_space<smem>>
    %9 = vector.broadcast %8 : f32 to vector<1x1xf32>
    %10 = arith.addf %7, %9 : vector<1x1xf32>
    %11 = math.tanh %10 : vector<1x1xf32>
    %c0_5 = arith.constant 0 : index
    %c0_6 = arith.constant 0 : index
    %12 = vector.load %arg3[%c0_5, %c0_6] : memref<1x1xf32, #tpu.memory_space<vmem>>, vector<1x1xf32>
    tpu.vector_store %arg3[%c0_5, %c0_6], %11 {strides = array<i32>} : memref<1x1xf32, #tpu.memory_space<vmem>>, vector<1x1xf32>,
    return
  }
}

</mosaic_0001>

<bundles_post_ra>
// kernel: tpu_custom_call.1
= control target key start
LH: loop header
LB: loop body
LE: loop exit
PB: predicated region body
PF: predicated region fallthrough
CT: control target
= control target key end

     0   :  { %vm19_vm0 = vcmask 253952   ;;  %s122_s0 = inlined_call_operand.vmem [shape: f32[1,32], index: 0, kind: input, shape index: {}]   ;;  %s123_s1 = inlined_call_operand.vmem [shape: f32[1,32], index: 1, kind: input, shape index: {}]   ;;  %s124_s2 = inlined_call_operand.<no memory space> [shape: f32[1,1], index: 2, kind: input, shape index: {}]   ;;  %s125_s3 = inlined_call_operand.hbm [shape: f32[1,1], index: 3, kind: output, shape index: {}]  }
   0x1   :  { %v16_v0 = vld [vmem:[%s122_s0] sm:$0x1] }
   0x2   :  { %v17_v1 = vld [vmem:[%s123_s1] sm:$0x1] }
   0x3   :  { %v18_v2 = vmul.f32 %v17_v1, %v16_v0 }
   0x4   :  { %9 = vsyncpa [#allocation4], 0  ;;  %v32_v11 = vstv %s124_s2  ;;  %s80_s1 = smov [#allocation3]   ;;  %vm35_vm1 = vcmask 0  }
   0x5   :  { %v20_v3 = vsel %vm19_vm0, %v18_v2, 0.0  ;;  %s43_s18 = sshll.u32 %s80_s1, 4  ;;  %s44_s18 = int_to_ptr.vmem [resolvable:$true] %s43_s18 }
   0x6   :  { %21 = vadd.xlane.f32.xlu0 %v20_v3  ;;  %s56_s19 = scalar_lea.vmem %s44_s18, 16  ;;  %s60_s20 = scalar_lea.vmem %s44_s18, 32 }
   0x7   :  { %p57_p0 = scmp.ne.s32.totalorder %s44_s18, %s56_s19  ;;  %p61_p1 = scmp.lt.s32.totalorder %s44_s18, %s44_s18 }
   0x8   :  { %p62_p2 = scmp.lt.s32.totalorder %s60_s20, %s56_s19 }
   0xa   :  { %p63_p3 = por %p62_p2, %p61_p1 }
   0xc   :  { %p64_p4 = pnand %p63_p3, %p57_p0 }
  0x93   :  { %v22_v4 = vpop.xlane.xlu0 %21 }
  0x94   :  { %v23_v5 = vrot.slane %v22_v4, 4 }
  0x96   :  { %v24_v6 = vadd.f32 %v23_v5, %v22_v4 }
  0x98   :  { %v25_v7 = vrot.slane %v24_v6, 2 }
  0x9a   :  { %v26_v8 = vadd.f32 %v25_v7, %v24_v6 }
  0x9c   :  { %v27_v9 = vrot.slane %v26_v8, 1 }
  0x9e   :  { %v28_v10 = vadd.f32 %v27_v9, %v26_v8 }
  0xa0   :  { %51 = vpush %v28_v10 }
  0xd1   :  { %s52_s0 = spop %51 }
  0xd2   :  { %v30_v12 = vstv %s52_s0 }
  0xd3   :  { %v33_v13 = vadd.f32 %v32_v11, %v30_v12 }
  0xd5   :  { %54 = vtanh.f32 %v33_v13 }
  0xdf   :  { %v55_v14 = vpop.eup %54 }
  0xe0   :  { %36 = vst.msk [vmem:[#allocation3] sm:$0x1] %vm35_vm1, %v55_v14 }
  0xe1   :  { %67 = shalt.err (!%p64_p4)
}
  0xe2   :  { %s68_s22 = scalar_lea.hbm %s125_s3, 16 }
  0xe3   :  { %p69_p5 = scmp.ne.s32.totalorder %s125_s3, %s68_s22  ;;  %p72_p6 = scmp.lt.u32.totalorder %s68_s22, %s125_s3 }
  0xe5   :  { %p74_p7 = pnand %p72_p6, %p69_p5 }
  0xe7   :  { %77 = shalt.err (!%p74_p7)
}
  0xe8   :  { %46 = dma.vmem_to_hbm [thread:$0]  %s44_s18, 16, %s125_s3, [#allocation4]  }
  0xe9   :  { %78 = dma.done.wait [#allocation4], 16  }
  0xea   :  { %79 = vsyncadd [#allocation4], 4294967280 }
  0xeb   :  { %50 = vsyncpa [#allocation4], 1 }

</bundles_post_ra>
